<compile_context>
chip_gen: v7x
topology: tpu7x:2x2x1
jax: 0.10.0
libtpu: 0.0.40
codegen_flags: <defaults>
</compile_context>

<pallas_src>
import jax
import jax.numpy as jnp
from jax import lax
from jax.experimental import pallas as pl
from jax.experimental.pallas import tpu as pltpu


def _conv_bn_mish_kernel(x_ref, w_ref, b_ref, o_ref):
    # x_ref: (1, K, t_hw)    bf16  channel-major im2col columns
    # w_ref: (C_pad, K)      bf16  BN-folded conv weight
    # b_ref: (C_pad, 1)      f32   BN-folded bias
    # o_ref: (1, C_pad, t_hw) f32
    acc = jnp.dot(w_ref[...], x_ref[0], preferred_element_type=jnp.float32)
    z = acc + b_ref[...]
    # Mish: z * tanh(softplus(z)) with a numerically stable softplus.
    sp = jnp.maximum(z, 0.0) + jnp.log(1.0 + jnp.exp(-jnp.abs(z)))
    o_ref[0] = (z * jnp.tanh(sp)).astype(o_ref.dtype)


def _round_up(x, m):
    return (x + m - 1) // m * m


def conv_bn_mish_forward(x, conv_w, bn_gamma, bn_beta, bn_mean, bn_var,
                         *, stride=1, padding=0, eps=1e-5,
                         max_tile_hw=1024, vmem_budget=24 * 1024 * 1024):
    """x: (B, C_in, H, W) f32; conv_w: (C_out, C_in, kh, kw) f32 (bias-free conv).
    BN params: (C_out,) f32 each (eval-mode running stats).
    Returns (B, C_out, H_out, W_out) f32, matching ConvBNMish.forward."""
    B, C_in, H, W = x.shape
    C_out, C_in_w, kh, kw = conv_w.shape
    assert C_in == C_in_w
    sh = sw = int(stride)
    ph = pw = int(padding)

    # ---- fold BatchNorm (eval mode) into the conv ----
    scale = bn_gamma * lax.rsqrt(bn_var + eps)                # (C_out,)
    shift = bn_beta - bn_mean * scale                         # (C_out,)
    K = C_in * kh * kw
    w_mat = conv_w.reshape(C_out, K) * scale[:, None]         # (C_out, K)

    C_pad = _round_up(max(C_out, 8), 8)
    w_pad = jnp.pad(w_mat, ((0, C_pad - C_out), (0, 0))).astype(jnp.bfloat16)
    b_pad = jnp.pad(shift, (0, C_pad - C_out)).reshape(C_pad, 1).astype(jnp.float32)

    # ---- channel-major patches (no NCHW<->NHWC transpose anywhere) ----
    x_bf = x.astype(jnp.bfloat16)
    if (kh, kw) == (1, 1) and (ph, pw) == (0, 0):
        xs = x_bf[:, :, ::sh, ::sw]
        Ho, Wo = xs.shape[2], xs.shape[3]
        patches = xs.reshape(B, K, Ho * Wo)
    else:
        # TODO(synk): im2col runs as a separate XLA pass for k>1; a halo-exchange Pallas
        # conv would avoid the prod(k)x patch expansion in HBM.
        patches = lax.conv_general_dilated_patches(
            x_bf, (kh, kw), (sh, sw), [(ph, ph), (pw, pw)],
            dimension_numbers=("NCHW", "OIHW", "NCHW"))
        Ho, Wo = patches.shape[2], patches.shape[3]
        patches = patches.reshape(B, K, Ho * Wo)
    HW = Ho * Wo

    # ---- spatial tile: as large as the VMEM budget allows (lane-dense, <= max_tile_hw) ----
    per_col_bytes = 2 * (K * 2) + 2 * (C_pad * 4)   # dbl-buffered bf16 patch col + f32 out col
    fit = max(128, (vmem_budget // per_col_bytes) // 128 * 128)
    t_hw = min(max_tile_hw, fit)
    if HW <= t_hw:
        t_hw = HW                                    # block == full dim is always legal
    n_hw = pl.cdiv(HW, t_hw)

    cost = pl.CostEstimate(
        flops=2 * B * HW * K * C_pad,
        transcendentals=2 * B * HW * C_pad,          # exp + tanh per output element
        bytes_accessed=(B * K * HW * 2 + C_pad * K * 2 + C_pad * 4 + B * C_pad * HW * 4))

    y = pl.pallas_call(
        _conv_bn_mish_kernel,
        out_shape=jax.ShapeDtypeStruct((B, C_pad, HW), jnp.float32),
        grid_spec=pltpu.PrefetchScalarGridSpec(
            num_scalar_prefetch=0,
            grid=(B, n_hw),
            in_specs=[
                pl.BlockSpec((1, K, t_hw), lambda b, i: (b, 0, i)),
                pl.BlockSpec((C_pad, K), lambda b, i: (0, 0)),
                pl.BlockSpec((C_pad, 1), lambda b, i: (0, 0)),
            ],
            out_specs=pl.BlockSpec((1, C_pad, t_hw), lambda b, i: (b, 0, i)),
        ),
        compiler_params=pltpu.CompilerParams(
            dimension_semantics=("parallel", "parallel")),
        cost_estimate=cost,
    )(patches, w_pad, b_pad)

    # Already NCHW-ordered: just drop channel padding and restore spatial dims.
    return y[:, :C_out, :].reshape(B, C_out, Ho, Wo)


def _reference(x, conv_w, gamma, beta, mean, var, *, stride, padding, eps=1e-5):
    conv = lax.conv_general_dilated(
        x, conv_w, (stride, stride), [(padding, padding), (padding, padding)],
        dimension_numbers=("NCHW", "OIHW", "NCHW"))
    scale = (gamma / jnp.sqrt(var + eps))[None, :, None, None]
    bn = (conv - mean[None, :, None, None]) * scale + beta[None, :, None, None]
    return bn * jnp.tanh(jax.nn.softplus(bn))


def _make_params(key, c_out, c_in, k):
    kw_, kg_, kb_, km_, kv_ = jax.random.split(key, 5)
    w = jax.random.normal(kw_, (c_out, c_in, k, k), jnp.float32) / jnp.sqrt(c_in * k * k)
    g = 1.0 + 0.1 * jax.random.normal(kg_, (c_out,), jnp.float32)
    b = 0.1 * jax.random.normal(kb_, (c_out,), jnp.float32)
    m = 0.1 * jax.random.normal(km_, (c_out,), jnp.float32)
    v = 1.0 + 0.5 * jax.random.uniform(kv_, (c_out,), jnp.float32)
    return w, g, b, m, v


if __name__ == "__main__":
    key = jax.random.PRNGKey(0)
    kx, kp1, kp2 = jax.random.split(key, 3)

    B, C_in, H, W = 2, 4, 16, 16
    x = jax.random.normal(kx, (B, C_in, H, W), dtype=jnp.float32)

    # Case 1: 3x3 conv, stride 1, padding 1 (general im2col path).
    w1, g1, b1, m1, v1 = _make_params(kp1, 8, C_in, 3)
    out1 = conv_bn_mish_forward(x, w1, g1, b1, m1, v1, stride=1, padding=1)
    jax.block_until_ready(out1)
    ref1 = _reference(x, w1, g1, b1, m1, v1, stride=1, padding=1)
    assert out1.shape == ref1.shape == (B, 8, H, W)
    assert jnp.allclose(out1, ref1, atol=5e-2, rtol=5e-2), \
        float(jnp.max(jnp.abs(out1 - ref1)))

    # Case 2: 1x1 conv, stride 1, padding 0 (transpose-free direct path).
    w2, g2, b2, m2, v2 = _make_params(kp2, 16, C_in, 1)
    out2 = conv_bn_mish_forward(x, w2, g2, b2, m2, v2, stride=1, padding=0)
    jax.block_until_ready(out2)
    ref2 = _reference(x, w2, g2, b2, m2, v2, stride=1, padding=0)
    assert out2.shape == ref2.shape == (B, 16, H, W)
    assert jnp.allclose(out2, ref2, atol=5e-2, rtol=5e-2), \
        float(jnp.max(jnp.abs(out2 - ref2)))

    print("KERNEL_OK")
</pallas_src>

<mosaic_0001>
module attributes {stable_mosaic.version = 11 : i64} {
  func.func @_conv_bn_mish_kernel(%arg0: i32, %arg1: i32, %arg2: memref<1x36x256xbf16, #tpu.memory_space<vmem>>, %arg3: memref<8x36xbf16, #tpu.memory_space<vmem>>, %arg4: memref<8x1xf32, #tpu.memory_space<vmem>>, %arg5: memref<1x8x256xf32, #tpu.memory_space<vmem>>) attributes {dimension_semantics = [#tpu.dimension_semantics<parallel>, #tpu.dimension_semantics<parallel>], iteration_bounds = array<i64: 2, 1>, scalar_prefetch = 0 : i64, scratch_operands = 0 : i64, tpu.core_type = #tpu.core_type<tc>, window_params = [{transform_indices = @transform_0, window_bounds = array<i64: 1, 36, 256>}, {pipeline_mode = #tpu.pipeline_mode<synchronous>, transform_indices = @transform_1, window_bounds = array<i64: 8, 36>}, {pipeline_mode = #tpu.pipeline_mode<synchronous>, transform_indices = @transform_2, window_bounds = array<i64: 8, 1>}, {transform_indices = @transform_3, window_bounds = array<i64: 1, 8, 256>}]} {
    %c0 = arith.constant 0 : index
    %c0_0 = arith.constant 0 : index
    %0 = vector.load %arg3[%c0, %c0_0] : memref<8x36xbf16, #tpu.memory_space<vmem>>, vector<8x36xbf16>
    %c0_1 = arith.constant 0 : index
    %c0_2 = arith.constant 0 : index
    %c0_3 = arith.constant 0 : index
    %1 = vector.load %arg2[%c0_1, %c0_2, %c0_3] : memref<1x36x256xbf16, #tpu.memory_space<vmem>>, vector<1x36x256xbf16>
    %2 = vector.shape_cast %1 : vector<1x36x256xbf16> to vector<36x256xbf16>
    %cst = arith.constant dense<0.000000e+00> : vector<8x256xf32>
    %3 = tpu.matmul %0, %2, %cst {dimension_numbers = #tpu.dot_dimension_numbers<[1], [0], [0], [1], [0, 0, 1, 1], [], []>} : vector<8x36xbf16>, vector<36x256xbf16>, vector<8x256xf32> -> vector<8x256xf32>
    %c0_4 = arith.constant 0 : index
    %c0_5 = arith.constant 0 : index
    %4 = vector.load %arg4[%c0_4, %c0_5] : memref<8x1xf32, #tpu.memory_space<vmem>>, vector<8x1xf32>
    %5 = vector.broadcast %4 : vector<8x1xf32> to vector<8x256xf32>
    %6 = arith.addf %3, %5 : vector<8x256xf32>
    %cst_6 = arith.constant 0.000000e+00 : f32
    %7 = vector.broadcast %cst_6 : f32 to vector<8x256xf32>
    %8 = arith.maximumf %6, %7 : vector<8x256xf32>
    %9 = math.absf %6 : vector<8x256xf32>
    %cst_7 = arith.constant 0.000000e+00 : f32
    %10 = vector.broadcast %cst_7 : f32 to vector<8x256xf32>
    %11 = arith.subf %10, %9 : vector<8x256xf32>
    %12 = math.exp %11 : vector<8x256xf32>
    %cst_8 = arith.constant 1.000000e+00 : f32
    %13 = vector.broadcast %cst_8 : f32 to vector<8x256xf32>
    %14 = arith.addf %13, %12 : vector<8x256xf32>
    %15 = math.log %14 : vector<8x256xf32>
    %16 = arith.addf %8, %15 : vector<8x256xf32>
    %17 = math.tanh %16 : vector<8x256xf32>
    %18 = arith.mulf %6, %17 : vector<8x256xf32>
    %c0_9 = arith.constant 0 : index
    %c0_10 = arith.constant 0 : index
    %c0_11 = arith.constant 0 : index
    %19 = vector.load %arg5[%c0_9, %c0_10, %c0_11] : memref<1x8x256xf32, #tpu.memory_space<vmem>>, vector<1x8x256xf32>
    %20 = vector.shape_cast %19 : vector<1x8x256xf32> to vector<8x256xf32>
    %21 = vector.shape_cast %18 : vector<8x256xf32> to vector<1x8x256xf32>
    tpu.vector_store %arg5[%c0_9, %c0_10, %c0_11], %21 {strides = array<i32>} : memref<1x8x256xf32, #tpu.memory_space<vmem>>, vector<1x8x256xf32>,
    return
  }
  func.func @transform_0(%arg0: i32, %arg1: i32) -> (i32, i32, i32) {
    %c0_i32 = arith.constant 0 : i32
    %c0_i32_0 = arith.constant 0 : i32
    return %arg0, %c0_i32, %arg1 : i32, i32, i32
  }
  func.func @transform_1(%arg0: i32, %arg1: i32) -> (i32, i32) {
    %c0_i32 = arith.constant 0 : i32
    %c0_i32_0 = arith.constant 0 : i32
    %c0_i32_1 = arith.constant 0 : i32
    return %c0_i32, %c0_i32_0 : i32, i32
  }
  func.func @transform_2(%arg0: i32, %arg1: i32) -> (i32, i32) {
    %c0_i32 = arith.constant 0 : i32
    %c0_i32_0 = arith.constant 0 : i32
    %c0_i32_1 = arith.constant 0 : i32
    return %c0_i32, %c0_i32_0 : i32, i32
  }
  func.func @transform_3(%arg0: i32, %arg1: i32) -> (i32, i32, i32) {
    %c0_i32 = arith.constant 0 : i32
    %c0_i32_0 = arith.constant 0 : i32
    return %arg0, %c0_i32, %arg1 : i32, i32, i32
  }
}

</mosaic_0001>

<bundles_post_ra>
// kernel: tpu_custom_call.1
= control target key start
LH: loop header
LB: loop body
LE: loop exit
PB: predicated region body
PF: predicated region fallthrough
CT: control target
= control target key end

     0   :  { %8 = vsyncpa [#allocation3], 0  ;;  %s726_s0 = inlined_call_operand.vmem [shape: bf16[2,36,256], index: 0, kind: input, shape index: {}]   ;;  %s727_s1 = inlined_call_operand.vmem [shape: bf16[8,36], index: 1, kind: input, shape index: {}]   ;;  %s728_s2 = inlined_call_operand.vmem [shape: f32[8,1], index: 2, kind: input, shape index: {}]   ;;  %s729_s3 = inlined_call_operand.hbm [shape: f32[2,8,256], index: 3, kind: output, shape index: {}]  }
   0x1   :  { %10 = vsyncpa [#allocation3 + $0x1], 0  ;;  %s608_s12 = smov 0   ;;  %s610_s13 = smov 0  }
   0x2   :  { %s612_s14 = smov 0   ;;  %s614_s15 = smov 0  }
   0x3   :  { %s616_s16 = smov 0   ;;  %s618_s17 = smov 0  }
   0x4 LB: > { %s407_s18 = sadd.s32 4294967295, %s584_s17   ;;  %s408_s19 = sadd.s32 4294967294, %s584_s17   ;;  %s584_s17 = sphi %s618_s17, %s16_s17   ;;  %s580_s16 = sphi %s616_s16, %s736_s16   ;;  %s576_s15 = sphi %s614_s15, %s735_s15   ;;  %s572_s14 = sphi %s612_s14, %s734_s14   ;;  %s568_s13 = sphi %s610_s13, %s733_s13   ;;  %s564_s12 = sphi %s608_s12, %s732_s12  }
   0x5   : > { %s28_s20 = sadd.s32 1, %s580_s16  ;;  %s107_s21 = sadd.s32 1, %s572_s14 }
   0x6   : > { %p30_p0 = scmp.ge.s32.totalorder %s28_s20, 2  ;;  %p117_p1 = scmp.ne.s32.totalorder %s572_s14, %s568_s13 }
   0x7   : > { %p118_p2 = scmp.eq.s32.totalorder %s407_s18, 1  ;;  %p123_p3 = scmp.ne.s32.totalorder %s568_s13, %s564_s12 }
   0x8   : > { %s738_s20 = smov (%p30_p0, %s28_s20), 0  ;;  %p124_p5 = scmp.eq.s32.totalorder %s408_s19, 1 }
   0x9   : > { %p648_p4 = por %p118_p2, %p117_p1  ;;  %s102_s23 = ssub.s32 %s580_s16, %s738_s20 }
   0xa   : > { %p411_p6 = scmp.ge.s32.totalorder %s584_s17, 1  ;;  %p105_p7 = scmp.eq.s32.totalorder %s102_s23, 0 }
   0xb   : > { %p655_p8 = por %p124_p5, %p123_p3  ;;  %p161_p9 = scmp.lt.s32.totalorder %s584_s17, 3 }
   0xc   : > { %s661_s25 = scalar_select %p105_p7, %s572_s14, %s107_s21  }
   0xd   : > { %p162_p10 = pnand %p411_p6, %p161_p9 }
   0xe   : > { %p190_p11 = scmp.lt.s32.totalorder (!%p162_p10), %s576_s15, 1  ;;  %v586_v0 = vmov (!%p162_p10), 0   ;;  %v207_v1 = vld [vmem:[%s728_s2] sm:$0xff] (!%p162_p10)  ;;  %vm242_vm0 = vcmask (!%p162_p10), 1041408   ;;  %vm238_vm1 = vcmask (!%p162_p10), 293888   ;;  %s186_s8 = sand.u32 (!%p162_p10), 1, %s568_s13  }
   0xf   : > { %165 = sbr.rel (%p162_p10) target bundleno = 316 (0x13c), region = 32  ;;  %281 = vmatprep.mubr.bf16.mxu0 (!%p162_p10), %v586_v0  ;;  %485 = vset.pattern.permute.xlu0 (!%p162_p10), %v586_v0  ;;  %v201_v10 = vld [vmem:[%s727_s1] sm:$0xf] (!%p162_p10)  ;;  %s412_s9 = sshll.u32 (!%p162_p10), %s186_s8, 4 }
  0x10   : > { %210 = vperm.xlu0 (!%p162_p10), %485, %v207_v1   ;;  %s427_s10 = sshll.u32 (!%p162_p10), %s576_s15, 8  ;;  %s188_s11 = scalar_lea.vmem (!%p162_p10), [#allocation2], %s412_s9 }
  0x11   : > { %s331_s18 = sshll.u32 (!%p162_p10), %s188_s11, 4  ;;  %s679_s23 = scalar_lea.hbm (!%p162_p10), %s729_s3, %s427_s10  ;;  %s681_s18 = int_to_ptr.vmem [resolvable:$true] %s331_s18 }
  0x12   : > { %s315_s26 = scalar_lea.sflag (!%p162_p10), [#allocation3], %s186_s8  ;;  %s587_s27 = smov (!%p162_p10), [#allocation2]  }
  0x16   : > { %s191_s28 = scalar_select %p190_p11, %s576_s15, 1 }
  0x17   : > { %s506_s15 = scalar_lea.vmem %s681_s18, 256 }
  0x18   : > { %s428_s29 = smul.u32 40, %s191_s28  ;;  %p507_p12 = scmp.ne.s32.totalorder %s681_s18, %s506_s15 }
  0x19   : > { %s510_s28 = sshll.u32 %s587_s27, 4  ;;  %s511_s28 = int_to_ptr.vmem [resolvable:$false] %s510_s28 }
  0x1a   : > { %s197_s5 = scalar_lea.vmem %s726_s0, %s428_s29  ;;  %p508_p13 = pnand %p507_p12, %p648_p4 }
  0x1b   : > { %v486_v2 = vld [vmem:[%s197_s5 + $0x4] ss:$8 sps:$4 sm:$0xff]   ;;  %v488_v3 = vld [vmem:[%s197_s5] ss:$8 sps:$4 sm:$0xff]   ;;  %v489_v4 = vld [vmem:[%s197_s5 + $0x14] ss:$8 sps:$4 sm:$0xff]   ;;  %p513_p1 = scmp.lt.s32.totalorder %s681_s18, %s511_s28 }
  0x1c   : > { %249 = vmatprep.subr.bf16.mxu0 %v486_v2  ;;  %v206_v5 = vld [vmem:[%s197_s5 + $0x20] sm:$0x33]  ;;  %v491_v6 = vld [vmem:[%s197_s5 + $0x10] ss:$8 sps:$4 sm:$0xff]   ;;  %p509_p0 = pneg %p508_p13  ;;  %s512_s29 = scalar_lea.vmem %s511_s28, 512 }
  0x1d   : > { %250 = vmatpush1.bf16.msra.mxu0 %v488_v3  ;;  %v419_v7 = vcombine.high %v206_v5, %v206_v5  ;;  %v418_v8 = vcombine.low %v206_v5, %v206_v5  ;;  %p514_p2 = scmp.lt.s32.totalorder %s512_s29, %s506_s15 }
  0x1e   : > { %251 = vmatprep.subr.bf16.mxu0 %v489_v4 }
  0x1f   : > { %v244_v9 = vsel %vm242_vm0, %v418_v8, 0  ;;  %p515_p3 = por %p514_p2, %p513_p1 }
  0x21   : > { %252 = vmatpush1.bf16.msra.mxu0 %v491_v6  ;;  %p516_p5 = pnand %p515_p3, %p509_p0 }
  0x22   : > { %420 = vmatprep.subr.msk.bf16.mxu0 %vm242_vm0, %v419_v7 }
  0x25   : > { %254 = vmatpush1.bf16.msra.mxu0 %v244_v9 }
  0x28   : > { %421 = vmatmul.mubr.msk.bf16.vlgmr.msra.gmra.mrb[0].mxu0 %vm238_vm1, %v201_v10 }
  0x8f   : > { %v211_v11 = vpop.permute.xlu0 %210 }
  0xfb   : > { %v283_v12 = vpop.f32.mrb[0].mxu0 }
  0xfc   : > { %v284_v13 = vadd.f32 %v283_v12, %v211_v11  ;;  %v285_v14 = vpop.f32.mrb[1].mxu0 }
  0xfd   : > { %v286_v15 = vadd.f32 %v285_v14, %v211_v11  ;;  %v287_v16 = vpop.f32.mrb[2].mxu0 }
  0xfe   : > { %v292_v17 = vand.u32 2147483647, %v284_v13  ;;  %v288_v18 = vpop.f32.mrb[3].mxu0  ;;  %v290_v30 = vmax.f32 %v284_v13, 0.0 }
  0xff   : > { %v293_v19 = vand.u32 2147483647, %v286_v15  ;;  %v291_v32 = vmax.f32 %v286_v15, 0.0 }
 0x100   : > { %v294_v20 = vsub.f32 0.0, %v292_v17 }
 0x101   : > { %v295_v21 = vsub.f32 0.0, %v293_v19 }
 0x102   : > { %v296_v22 = vmul.f32 1.442695, %v294_v20 }
 0x103   : > { %v298_v23 = vmul.f32 1.442695, %v295_v21 }
 0x104   : > { %494 = vpow2.f32 %v296_v22 }
 0x105   : > { %496 = vpow2.f32 %v298_v23 }
 0x10e   : > { %v495_v24 = vpop.eup %494 }
 0x10f   : > { %v497_v25 = vpop.eup %496  ;;  %v300_v26 = vadd.f32 1.0, %v495_v24 }
 0x110   : > { %v301_v27 = vadd.f32 1.0, %v497_v25 }
 0x111   : > { %498 = vlog2.f32 %v300_v26 }
 0x112   : > { %500 = vlog2.f32 %v301_v27 }
 0x11b   : > { %v499_v28 = vpop.eup %498 }
 0x11c   : > { %v501_v29 = vpop.eup %500  ;;  %v303_v31 = vmul.f32 0.6931472, %v499_v28 }
 0x11d   : > { %v305_v33 = vmul.f32 0.6931472, %v501_v29 }
 0x11e   : > { %v306_v34 = vadd.f32 %v303_v31, %v290_v30 }
 0x11f   : > { %v307_v35 = vadd.f32 %v305_v33, %v291_v32 }
 0x120   : > { %502 = vtanh.f32 %v306_v34 }
 0x121   : > { %504 = vtanh.f32 %v307_v35 }
 0x12a   : > { %v503_v36 = vpop.eup %502 }
 0x12b   : > { %v505_v37 = vpop.eup %504  ;;  %v310_v38 = vmul.f32 %v503_v36, %v284_v13 }
 0x12c   : > { %v311_v39 = vmul.f32 %v505_v37, %v286_v15 }
 0x12d   : > { %312 = vst [vmem:[%s188_s11] sm:$0xff] %v310_v38 }
 0x12e   : > { %313 = vst [vmem:[%s188_s11 + $0x8] sm:$0xff] %v311_v39 }
 0x12f   : > { %519 = shalt.err (!%p516_p5)
}
 0x130   : > { %s520_s30 = scalar_lea.hbm %s679_s23, 256  ;;  %s524_s6 = scalar_lea.hbm %s729_s3, 512 }
 0x131   : > { %p521_p6 = scmp.ne.s32.totalorder %s679_s23, %s520_s30  ;;  %p525_p10 = scmp.lt.u32.totalorder %s679_s23, %s729_s3 }
 0x132   : > { %p526_p11 = scmp.lt.u32.totalorder %s524_s6, %s520_s30  ;;  %p528_p13 = scmp.lt.u32.totalorder %s520_s30, %s679_s23 }
 0x133   : > { %p522_p7 = pnand %p521_p6, %p648_p4 }
 0x134   : > { %p527_p12 = por %p526_p11, %p525_p10 }
 0x135   : > { %p523_p9 = pneg %p522_p7 }
 0x136   : > { %p529_p0 = por %p528_p13, %p527_p12 }
 0x138   : > { %p530_p1 = pnand %p529_p0, %p523_p9 }
 0x13a   : > { %533 = shalt.err (!%p530_p1)
}
 0x13b   : > { %429 = dma.vmem_to_hbm [thread:$0]  (%p648_p4), %s681_s18, 256, %s679_s23, %s315_s26  }
 0x13c PF: > { %p435_p2 = scmp.ge.s32.totalorder %s584_s17, 2  ;;  %s343_s9 = sand.u32 1, %s564_s12  }
 0x13d   : > { %s344_s10 = scalar_lea.sflag [#allocation3], %s343_s9 }
 0x13e   : > { %p432_p3 = pnand %p435_p2, %p655_p8 }
 0x140   : > { %559 = dma.done.wait (!%p432_p3), %s344_s10, 256  }
 0x141   : > { %561 = vsyncadd (!%p432_p3), %s344_s10, 4294967040  ;;  %s16_s17 = sadd.s32 1, %s584_s17   ;;  %s732_s12 = smov %s568_s13 }
 0x142   : > { %p13_p5 = scmp.ge.s32.totalorder %s16_s17, 4   ;;  %s733_s13 = smov %s572_s14 }
 0x143   : > { %s734_s14 = smov %s661_s25  ;;  %s735_s15 = smov %s580_s16 }
 0x144   : > { %s736_s16 = smov %s738_s20  ;;  %15 = sbr.rel (!%p13_p5) target bundleno = 4 (0x4), region = 67 }
 0x14b   :  { %349 = vsyncpa [#allocation3], 1 }
 0x14c   :  { %351 = vsyncpa [#allocation3 + $0x1], 1 }

</bundles_post_ra>
